<compile_context>
chip_gen: v5e
topology: v5e:2x2
jax: 0.10.0
libtpu: 0.0.40
codegen_flags: <defaults>
</compile_context>

<pallas_src>
import jax
import jax.numpy as jnp
from jax.experimental import pallas as pl
from jax.experimental.pallas import tpu as pltpu


def _identity_kernel(x_ref, o_ref):
    # Pure passthrough on the VMEM tile (the only "hot path" the stub implies).
    o_ref[...] = x_ref[...]


def pallas_identity(x: jax.Array) -> jax.Array:
    """Tiled identity copy through a Pallas TPU kernel (lane-dense, large blocks)."""
    orig_shape = x.shape
    n = x.size
    itemsize = x.dtype.itemsize

    # --- Lane-dense 2D view: prefer a column width that is a big multiple of 128.
    lane = 0
    for c in (4096, 2048, 1024, 512, 256, 128):
        if n % c == 0:
            lane = c
            break
    if lane:
        x2d = x.reshape(n // lane, lane)
    else:
        # Fallback for sizes with no 128-multiple factor: keep the last dim.
        # TODO(synk): lane-sparse fallback uses masked stores on the edge lanes.
        x2d = x.reshape(-1, orig_shape[-1]) if x.ndim > 1 else x.reshape(1, -1)
    rows, cols = x2d.shape

    # --- Block sizing: full lane width, row-blocked to ~2 MiB per block.
    # With input + output double-buffered this is ~8 MiB of VMEM -> fits the
    # default scoped limit on v5e (16 MiB), v6e (32 MiB) and v7x (32 MiB).
    target_block_bytes = 2 * 1024 * 1024
    bytes_per_row = max(1, cols * itemsize)
    max_rows = max(1, target_block_bytes // bytes_per_row)

    # Sublane packing multiple for the dtype (8 for f32, 16 for bf16, 32 for i8).
    packing = max(1, 4 // itemsize)
    sub = 8 * packing

    if rows <= max_rows:
        block_r = rows                      # full array dim -> always legal
    else:
        block_r = max(sub, (max_rows // sub) * sub)
    block_c = cols                          # full lane width (multiple of 128 in dense path)

    grid = (pl.cdiv(rows, block_r),)

    out = pl.pallas_call(
        _identity_kernel,
        out_shape=jax.ShapeDtypeStruct((rows, cols), x.dtype),
        grid=grid,
        in_specs=[pl.BlockSpec((block_r, block_c), lambda i: (i, 0))],
        out_specs=pl.BlockSpec((block_r, block_c), lambda i: (i, 0)),
        compiler_params=pltpu.CompilerParams(
            dimension_semantics=("parallel",),
        ),
        cost_estimate=pl.CostEstimate(
            flops=0, transcendentals=0, bytes_accessed=2 * n * itemsize
        ),
    )(x2d)

    return out.reshape(orig_shape)


class RewardFactory:
    """JAX/Pallas mirror of mixer.RewardFactory (a parameter-free stub)."""

    def __init__(self):
        # Reference __init__ defines no parameters.
        pass

    def forward(self, input, target, tt):
        # Reference forward is `pass` -> returns None.  Semantics preserved.
        # TODO(synk): reference forward has no body; no compute to translate.
        return None

    def __call__(self, input, target, tt):
        return self.forward(input, target, tt)

    def num_samples(self):
        # Reference num_samples is `pass` -> returns None.
        return None


if __name__ == "__main__":
    key = jax.random.PRNGKey(0)
    k1, k2 = jax.random.split(key)

    # Small NCHW-shaped example inputs consistent with a reward module's
    # (prediction, target, timestep) signature.
    x = jax.random.normal(k1, (2, 4, 16, 16), dtype=jnp.float32)   # input
    t = jax.random.normal(k2, (2, 4, 16, 16), dtype=jnp.float32)   # target
    tt = jnp.int32(0)                                              # timestep

    # Exercise the Pallas kernel path (lane-dense identity passthrough of `input`).
    y = pallas_identity(x)
    jax.block_until_ready(y)
    assert y.shape == x.shape and y.dtype == x.dtype
    assert bool(jnp.allclose(y, x))

    # Reproduce the reference forward semantics exactly (returns None).
    factory = RewardFactory()
    result = factory(x, t, tt)
    assert result is None
    assert factory.num_samples() is None

    print("KERNEL_OK")
</pallas_src>

<mosaic_0001>
module attributes {stable_mosaic.version = 11 : i64} {
  func.func @_identity_kernel(%arg0: i32, %arg1: memref<1x2048xf32, #tpu.memory_space<vmem>>, %arg2: memref<1x2048xf32, #tpu.memory_space<vmem>>) attributes {dimension_semantics = [#tpu.dimension_semantics<parallel>], iteration_bounds = array<i64: 1>, scalar_prefetch = 0 : i64, scratch_operands = 0 : i64, tpu.core_type = #tpu.core_type<tc>, window_params = [{transform_indices = @transform_0, window_bounds = array<i64: 1, 2048>}, {transform_indices = @transform_1, window_bounds = array<i64: 1, 2048>}]} {
    %c0 = arith.constant 0 : index
    %c0_0 = arith.constant 0 : index
    %0 = vector.load %arg1[%c0, %c0_0] : memref<1x2048xf32, #tpu.memory_space<vmem>>, vector<1x2048xf32>
    %c0_1 = arith.constant 0 : index
    %c0_2 = arith.constant 0 : index
    %1 = vector.load %arg2[%c0_1, %c0_2] : memref<1x2048xf32, #tpu.memory_space<vmem>>, vector<1x2048xf32>
    tpu.vector_store %arg2[%c0_1, %c0_2], %0 {strides = array<i32>} : memref<1x2048xf32, #tpu.memory_space<vmem>>, vector<1x2048xf32>,
    return
  }
  func.func @transform_0(%arg0: i32) -> (i32, i32) {
    %c0_i32 = arith.constant 0 : i32
    %c0_i32_0 = arith.constant 0 : i32
    return %arg0, %c0_i32 : i32, i32
  }
  func.func @transform_1(%arg0: i32) -> (i32, i32) {
    %c0_i32 = arith.constant 0 : i32
    %c0_i32_0 = arith.constant 0 : i32
    return %arg0, %c0_i32 : i32, i32
  }
}

</mosaic_0001>

<bundles_post_ra>
// kernel: tpu_custom_call.1
= control target key start
LH: loop header
LB: loop body
LE: loop exit
PB: predicated region body
PF: predicated region fallthrough
CT: control target
= control target key end

     0   :  { %6 = vsyncpa [#allocation3], 0  ;;  %s116_s0 = inlined_call_operand.hbm [shape: f32[1,2048], index: 0, kind: input, shape index: {}]   ;;  %s117_s1 = inlined_call_operand.hbm [shape: f32[1,2048], index: 1, kind: output, shape index: {}]  }
   0x1   :  { %7 = vsyncpa [#allocation4], 0  ;;  %s13_s8 = sshll.u32 %s116_s0, 4  ;;  %s98_s9 = smov [#allocation2]   ;;  %s14_s8 = int_to_ptr.hbm [resolvable:$true] %s13_s8 }
   0x2   :  { %s15_s10 = sshll.u32 %s98_s9, 4  ;;  %s16_s10 = int_to_ptr.vmem [resolvable:$true] %s15_s10 }
   0x3   :  { %18 = dma.hbm_to_vmem [thread:$0]  %s14_s8, 256, %s16_s10, [#allocation3]  }
   0x4   :  { %94 = dma.done.wait [#allocation3], 256  }
   0x5   :  { %95 = vsyncadd [#allocation3], 4294967040  ;;  %s99_s11 = smov [#allocation5]   ;;  %s34_s15 = sshll.u32 %s117_s1, 4  ;;  %v23_v0 = vld [vmem:[#allocation2] sm:$0xff]  ;;  %v24_v1 = vld [vmem:[#allocation2 + $0x8] sm:$0xff]  ;;  %s35_s15 = int_to_ptr.hbm [resolvable:$true] %s34_s15 }
   0x6   :  { %s32_s12 = sshll.u32 %s99_s11, 4  ;;  %25 = vst [vmem:[#allocation5] sm:$0xff] %v23_v0  ;;  %s33_s12 = int_to_ptr.vmem [resolvable:$true] %s32_s12 }
   0x7   :  { %26 = vst [vmem:[#allocation5 + $0x8] sm:$0xff] %v24_v1 }
   0x8   :  { %37 = dma.vmem_to_hbm [thread:$0]  %s33_s12, 256, %s35_s15, [#allocation4]  }
   0x9   :  { %96 = dma.done.wait [#allocation4], 256  }
   0xa   :  { %97 = vsyncadd [#allocation4], 4294967040 }
   0xb   :  { %42 = vsyncpa [#allocation3], 1 }
   0xc   :  { %43 = vsyncpa [#allocation4], 1 }

</bundles_post_ra>
